<compile_context>
chip_gen: v6e
topology: v6e:2x2x1
jax: 0.10.0
libtpu: 0.0.40
codegen_flags: <defaults>
</compile_context>

<pallas_src>
import jax
import jax.numpy as jnp
from jax.experimental import pallas as pl
from jax.experimental.pallas import tpu as pltpu


# ---------------------------------------------------------------------------
# Kernels
# ---------------------------------------------------------------------------
def folded_mlp_kernel(x_ref, w_ref, b_ref, o_ref):
    """Whole eval-mode network folded to one affine map: y = x @ W_total + b."""
    o_ref[...] = (
        jnp.dot(x_ref[...], w_ref[...], preferred_element_type=jnp.float32)
        + b_ref[...]
    ).astype(o_ref.dtype)


def layered_mlp_kernel(x_ref,
                       w1_ref, b1_ref,
                       w2_ref, b2_ref,
                       w3_ref, b3_ref,
                       w45_ref, b45_ref,
                       o_ref):
    """Explicit layer chain (Dropout == identity in eval mode).

    The dropout-free tail Linear(64,16)@Linear(16,1) arrives pre-folded into a
    single [64,1] layer (w45/b45), so this is 4 MXU passes.  Accumulation is
    forced to f32 via preferred_element_type; no unconditional input upcast.
    """
    h = jnp.dot(x_ref[...], w1_ref[...], preferred_element_type=jnp.float32) + b1_ref[...]
    # TODO(synk): training-mode Dropout(0.2/0.2/0.1) via pltpu.prng_* would be
    # applied between these layers; only eval-mode (identity) semantics exist.
    h = jnp.dot(h, w2_ref[...], preferred_element_type=jnp.float32) + b2_ref[...]
    h = jnp.dot(h, w3_ref[...], preferred_element_type=jnp.float32) + b3_ref[...]
    h = jnp.dot(h, w45_ref[...], preferred_element_type=jnp.float32) + b45_ref[...]
    o_ref[...] = h.astype(o_ref.dtype)


# ---------------------------------------------------------------------------
# One-time capability probe: single-buffered constant-index params
# ---------------------------------------------------------------------------
_SINGLE_BUFFER_OK = None


def _single_buffer_params_supported():
    """Probe once (eagerly) whether this JAX/Mosaic build accepts and correctly
    runs pipeline_mode=pl.Buffered(1) on a constant-index BlockSpec.  If not,
    fall back to default double-buffering (costs ~one extra copy of params)."""
    global _SINGLE_BUFFER_OK
    if _SINGLE_BUFFER_OK is not None:
        return _SINGLE_BUFFER_OK

    def _probe_kernel(w_ref, o_ref):
        o_ref[...] = w_ref[...] * 2.0

    try:
        res = pl.pallas_call(
            _probe_kernel,
            out_shape=jax.ShapeDtypeStruct((16, 128), jnp.float32),
            grid=(2,),
            in_specs=[pl.BlockSpec((8, 128), lambda i: (0, 0),
                                   pipeline_mode=pl.Buffered(1))],
            out_specs=pl.BlockSpec((8, 128), lambda i: (i, 0)),
        )(jnp.ones((8, 128), jnp.float32))
        _SINGLE_BUFFER_OK = bool(jnp.allclose(jax.block_until_ready(res), 2.0))
    except Exception:  # version-dependent: fall back to double-buffering
        _SINGLE_BUFFER_OK = False
    return _SINGLE_BUFFER_OK


# ---------------------------------------------------------------------------
# Wrapper
# ---------------------------------------------------------------------------
def _pick_tm(B):
    """Batch-tile (rows per grid step).

    - Tiny batches: one block.
    - Otherwise aim for >= 2 grid blocks so dimension_semantics=("parallel",)
      can shard the batch across v7x's two TensorCores, capped at 1024 rows:
      512-1024-row tiles sit near the HBM roofline (vs ~63% at 256 rows) and
      2 * 1024 * 768 * 4 B of double-buffered x stays well inside v5e's scoped
      VMEM.
    """
    if B <= 16:
        return B
    half = pl.cdiv(B, 2)
    tm = ((half + 7) // 8) * 8          # sublane (8-row) granularity
    return min(tm, 1024)


def _run_affine_kernel(kernel, x, params, out_dim, *, tm=None,
                       single_buffer_params=False,
                       vmem_limit_bytes=32 << 20):
    """Shared pallas_call wrapper: batch grid over rows, VMEM-resident params."""
    B, D = x.shape
    tm = _pick_tm(B) if tm is None else min(tm, B)
    grid = (pl.cdiv(B, tm),)

    x_spec = pl.BlockSpec((tm, D), lambda i: (i, 0))
    # Full-array blocks with a constant index_map: weights/biases are fetched
    # once and stay VMEM-resident across all batch-grid steps.  Buffered(1)
    # single-buffers them (no point double-buffering a block whose index never
    # changes) -- saves ~3.7 MB of VMEM on the layered path.
    if single_buffer_params:
        param_specs = [pl.BlockSpec(p.shape, lambda i: (0, 0),
                                    pipeline_mode=pl.Buffered(1))
                       for p in params]
    else:
        param_specs = [pl.BlockSpec(p.shape, lambda i: (0, 0)) for p in params]
    # Output block is (tm, 1): lane-sparse stores, but total output traffic is
    # only B*4 bytes, so the lane-dense-output transform is deliberately skipped.
    out_spec = pl.BlockSpec((tm, out_dim), lambda i: (i, 0))

    return pl.pallas_call(
        kernel,
        out_shape=jax.ShapeDtypeStruct((B, out_dim), jnp.float32),
        grid=grid,
        in_specs=[x_spec] + param_specs,
        out_specs=out_spec,
        compiler_params=pltpu.CompilerParams(
            # Independent batch tiles -> shard across v7x's 2 TensorCores;
            # harmless on single-TC v5e/v6e.
            dimension_semantics=("parallel",),
            # Explicit scoped-VMEM limit: <= v7x's default 32 MiB scope, well
            # under v5e/v6e physical VMEM, and gives the 1024-row x tiles
            # headroom beyond v5e's 16 MiB default scope.
            vmem_limit_bytes=vmem_limit_bytes,
        ),
    )(x, *params)


# ---------------------------------------------------------------------------
# Model builder (fold hoisted out of the per-call path)
# ---------------------------------------------------------------------------
def fold_params(params):
    """Collapse the eval-mode affine chain into (W_total [768,1], b_total [1,1]).

    Runs once at model-build time and always in f32, so bf16-stored weights do
    not lose precision in the fold."""
    w_t = params[0].astype(jnp.float32)
    b_t = params[1].astype(jnp.float32)
    for i in range(2, len(params), 2):
        w_i = params[i].astype(jnp.float32)
        w_t = w_t @ w_i
        b_t = b_t @ w_i + params[i + 1].astype(jnp.float32)
    return w_t, b_t


def make_aesthetic_mlp_forward(params, *, fold=True, training=False, tm=None):
    """Build a jitted forward pass.  Folding (and the tail-layer fold of the
    layered path) happens once here, not per call.

    The folded fast path is only valid when every Dropout is identity, so it
    is gated on training=False."""
    if training:
        # TODO(synk): training-mode dropout (stochastic masking via
        # pltpu.prng_*) is not implemented; it must use the layered path.
        raise NotImplementedError("training-mode dropout is not implemented")

    single_buf = _single_buffer_params_supported()   # eager, once per process

    if fold:
        kernel = folded_mlp_kernel
        kparams = list(fold_params(params))
    else:
        # Pre-fold the dropout-free tail Linear(64,16)@Linear(16,1) -> [64,1].
        w45 = params[6].astype(jnp.float32) @ params[8].astype(jnp.float32)
        b45 = (params[7].astype(jnp.float32) @ params[8].astype(jnp.float32)
               + params[9].astype(jnp.float32))
        kernel = layered_mlp_kernel
        kparams = list(params[:6]) + [w45, b45]

    @jax.jit
    def forward(x):
        return _run_affine_kernel(kernel, x, kparams, 1, tm=tm,
                                  single_buffer_params=single_buf)

    return forward


# ---------------------------------------------------------------------------
# Parameter init + pure-JAX reference
# ---------------------------------------------------------------------------
def init_params(key):
    """Deterministic synthetic parameters matching the nn.Linear shapes.
    Weights stored as [in, out] (transpose of PyTorch's [out, in])."""
    dims = [(768, 1024), (1024, 128), (128, 64), (64, 16), (16, 1)]
    params = []
    for (din, dout) in dims:
        key, kw, kb = jax.random.split(key, 3)
        bound = 1.0 / jnp.sqrt(din)  # PyTorch default U(-1/sqrt(in), 1/sqrt(in))
        w = jax.random.uniform(kw, (din, dout), jnp.float32, -bound, bound)
        b = jax.random.uniform(kb, (1, dout), jnp.float32, -bound, bound)
        params += [w, b]
    return params


def reference_forward(x, params):
    """Unfused layer-by-layer reference (eval-mode dropout == identity)."""
    h = x.astype(jnp.float32)
    for i in range(0, len(params), 2):
        h = h @ params[i] + params[i + 1]
    return h


if __name__ == "__main__":
    key = jax.random.PRNGKey(0)
    key, kx, kx2 = jax.random.split(key, 3)

    params = init_params(key)

    # Small batch (single grid block).
    B = 8
    x = jax.random.normal(kx, (B, 768), jnp.float32)
    ref = reference_forward(x, params)

    fwd_folded = make_aesthetic_mlp_forward(params, fold=True)
    out_folded = jax.block_until_ready(fwd_folded(x))
    assert out_folded.shape == (B, 1), out_folded.shape
    assert jnp.allclose(out_folded, ref, atol=1e-4, rtol=1e-4), "folded mismatch"

    fwd_layered = make_aesthetic_mlp_forward(params, fold=False)
    out_layered = jax.block_until_ready(fwd_layered(x))
    assert out_layered.shape == (B, 1), out_layered.shape
    assert jnp.allclose(out_layered, ref, atol=1e-4, rtol=1e-4), "layered mismatch"

    # Larger batch: exercises the multi-block grid (tm=256, grid=(2,)) so the
    # batch axis can be sharded across v7x's two TensorCores.
    B2 = 512
    x2 = jax.random.normal(kx2, (B2, 768), jnp.float32)
    ref2 = reference_forward(x2, params)
    out2 = jax.block_until_ready(fwd_folded(x2))
    assert out2.shape == (B2, 1), out2.shape
    assert jnp.allclose(out2, ref2, atol=1e-4, rtol=1e-4), "multi-block mismatch"

    # bf16 features: the folded path is bound by the x read from HBM, so bf16
    # halves its bytes; accumulation stays f32 inside the kernel.
    x_bf16 = x.astype(jnp.bfloat16)
    ref_bf16 = reference_forward(x_bf16.astype(jnp.float32), params)
    out_bf16 = jax.block_until_ready(fwd_folded(x_bf16))
    assert jnp.allclose(out_bf16, ref_bf16, atol=1e-3, rtol=1e-3), "bf16 mismatch"

    print("KERNEL_OK")
</pallas_src>

<mosaic_0001>
module attributes {stable_mosaic.version = 11 : i64} {
  func.func @_probe_kernel(%arg0: i32, %arg1: memref<8x128xf32, #tpu.memory_space<vmem>>, %arg2: memref<8x128xf32, #tpu.memory_space<vmem>>) attributes {dimension_semantics = [#tpu.dimension_semantics<arbitrary>], iteration_bounds = array<i64: 2>, scalar_prefetch = 0 : i64, scratch_operands = 0 : i64, tpu.core_type = #tpu.core_type<tc>, window_params = [{pipeline_mode = #tpu.pipeline_mode<synchronous>, transform_indices = @transform_0, window_bounds = array<i64: 8, 128>}, {transform_indices = @transform_1, window_bounds = array<i64: 8, 128>}]} {
    %c0 = arith.constant 0 : index
    %c0_0 = arith.constant 0 : index
    %0 = vector.load %arg1[%c0, %c0_0] : memref<8x128xf32, #tpu.memory_space<vmem>>, vector<8x128xf32>
    %cst = arith.constant 2.000000e+00 : f32
    %1 = vector.broadcast %cst : f32 to vector<8x128xf32>
    %2 = arith.mulf %0, %1 : vector<8x128xf32>
    %c0_1 = arith.constant 0 : index
    %c0_2 = arith.constant 0 : index
    %3 = vector.load %arg2[%c0_1, %c0_2] : memref<8x128xf32, #tpu.memory_space<vmem>>, vector<8x128xf32>
    tpu.vector_store %arg2[%c0_1, %c0_2], %2 {strides = array<i32>} : memref<8x128xf32, #tpu.memory_space<vmem>>, vector<8x128xf32>,
    return
  }
  func.func @transform_0(%arg0: i32) -> (i32, i32) {
    %c0_i32 = arith.constant 0 : i32
    %c0_i32_0 = arith.constant 0 : i32
    %c0_i32_1 = arith.constant 0 : i32
    return %c0_i32, %c0_i32_0 : i32, i32
  }
  func.func @transform_1(%arg0: i32) -> (i32, i32) {
    %c0_i32 = arith.constant 0 : i32
    %c0_i32_0 = arith.constant 0 : i32
    return %arg0, %c0_i32 : i32, i32
  }
}

module attributes {stable_mosaic.version = 11 : i64} {
  func.func @folded_mlp_kernel(%arg0: i32, %arg1: memref<8x768xf32, #tpu.memory_space<vmem>>, %arg2: memref<768x1xf32, #tpu.memory_space<vmem>>, %arg3: memref<1x1xf32, #tpu.memory_space<vmem>>, %arg4: memref<8x1xf32, #tpu.memory_space<vmem>>) attributes {dimension_semantics = [#tpu.dimension_semantics<parallel>], iteration_bounds = array<i64: 1>, scalar_prefetch = 0 : i64, scratch_operands = 0 : i64, tpu.core_type = #tpu.core_type<tc>, window_params = [{transform_indices = @transform_0, window_bounds = array<i64: 8, 768>}, {pipeline_mode = #tpu.pipeline_mode<synchronous>, transform_indices = @transform_1, window_bounds = array<i64: 768, 1>}, {pipeline_mode = #tpu.pipeline_mode<synchronous>, transform_indices = @transform_2, window_bounds = array<i64: 1, 1>}, {transform_indices = @transform_3, window_bounds = array<i64: 8, 1>}]} {
    %c0 = arith.constant 0 : index
    %c0_0 = arith.constant 0 : index
    %0 = vector.load %arg1[%c0, %c0_0] : memref<8x768xf32, #tpu.memory_space<vmem>>, vector<8x768xf32>
    %c0_1 = arith.constant 0 : index
    %c0_2 = arith.constant 0 : index
    %1 = vector.load %arg2[%c0_1, %c0_2] : memref<768x1xf32, #tpu.memory_space<vmem>>, vector<768x1xf32>
    %cst = arith.constant dense<0.000000e+00> : vector<8x1xf32>
    %2 = tpu.matmul %0, %1, %cst {dimension_numbers = #tpu.dot_dimension_numbers<[1], [0], [0], [1], [0, 0, 1, 1], [], []>} : vector<8x768xf32>, vector<768x1xf32>, vector<8x1xf32> -> vector<8x1xf32>
    %c0_3 = arith.constant 0 : index
    %c0_4 = arith.constant 0 : index
    %3 = vector.load %arg3[%c0_3, %c0_4] : memref<1x1xf32, #tpu.memory_space<vmem>>, vector<1x1xf32>
    %4 = vector.broadcast %3 : vector<1x1xf32> to vector<8x1xf32>
    %5 = arith.addf %2, %4 : vector<8x1xf32>
    %c0_5 = arith.constant 0 : index
    %c0_6 = arith.constant 0 : index
    %6 = vector.load %arg4[%c0_5, %c0_6] : memref<8x1xf32, #tpu.memory_space<vmem>>, vector<8x1xf32>
    tpu.vector_store %arg4[%c0_5, %c0_6], %5 {strides = array<i32>} : memref<8x1xf32, #tpu.memory_space<vmem>>, vector<8x1xf32>,
    return
  }
  func.func @transform_0(%arg0: i32) -> (i32, i32) {
    %c0_i32 = arith.constant 0 : i32
    %c0_i32_0 = arith.constant 0 : i32
    return %arg0, %c0_i32 : i32, i32
  }
  func.func @transform_1(%arg0: i32) -> (i32, i32) {
    %c0_i32 = arith.constant 0 : i32
    %c0_i32_0 = arith.constant 0 : i32
    %c0_i32_1 = arith.constant 0 : i32
    return %c0_i32, %c0_i32_0 : i32, i32
  }
  func.func @transform_2(%arg0: i32) -> (i32, i32) {
    %c0_i32 = arith.constant 0 : i32
    %c0_i32_0 = arith.constant 0 : i32
    %c0_i32_1 = arith.constant 0 : i32
    return %c0_i32, %c0_i32_0 : i32, i32
  }
  func.func @transform_3(%arg0: i32) -> (i32, i32) {
    %c0_i32 = arith.constant 0 : i32
    %c0_i32_0 = arith.constant 0 : i32
    return %arg0, %c0_i32 : i32, i32
  }
}

</mosaic_0001>

<bundles_post_ra>
// kernel: tpu_custom_call.1
= control target key start
LH: loop header
LB: loop body
LE: loop exit
PB: predicated region body
PF: predicated region fallthrough
CT: control target
= control target key end

     0   :  { %6 = vsyncpa [#allocation3], 0  ;;  %s448_s0 = inlined_call_operand.hbm [shape: f32[8,128], index: 0, kind: input, shape index: {}]   ;;  %s449_s1 = inlined_call_operand.hbm [shape: f32[16,128], index: 1, kind: output, shape index: {}]  }
   0x1   :  { %7 = vsyncpa [#allocation4], 0 }
   0x2   :  { %9 = vsyncpa [#allocation4 + $0x1], 0  ;;  %s348_s6 = smov 0   ;;  %s350_s7 = smov 0  }
   0x3   :  { %s352_s8 = smov 0   ;;  %s354_s9 = smov 0  }
   0x4 LB: > { %s369_s10 = sadd.s32 4294967295, %s334_s9   ;;  %s184_s11 = sadd.s32 4294967294, %s334_s9   ;;  %s334_s9 = sphi %s354_s9, %s457_s9   ;;  %s330_s8 = sphi %s352_s8, %s456_s8   ;;  %s326_s7 = sphi %s350_s7, %s455_s7   ;;  %s322_s6 = sphi %s348_s6, %s454_s6  }
   0x5   : > { %s373_s12 = sadd.s32 1, %s334_s9   ;;  %s43_s13 = sadd.s32 1, %s330_s8 }
   0x6   : > { %s40_s14 = ssub.s32 %s334_s9, %s373_s12  ;;  %p53_p0 = scmp.ne.s32.totalorder %s330_s8, %s326_s7 }
   0x7   : > { %p41_p1 = scmp.eq.s32.totalorder %s40_s14, 0  ;;  %p54_p2 = scmp.eq.s32.totalorder %s369_s10, 1 }
   0x8   : > { %p59_p3 = scmp.ne.s32.totalorder %s326_s7, %s322_s6  ;;  %p60_p4 = scmp.eq.s32.totalorder %s184_s11, 1 }
   0x9   : > { %s384_s15 = scalar_select %p41_p1, %s330_s8, %s43_s13  }
   0xa   : > { %p386_p5 = por %p54_p2, %p53_p0  ;;  %p390_p6 = por %p60_p4, %p59_p3 }
   0xb   : > { %p185_p7 = scmp.ge.s32.totalorder %s334_s9, 1  ;;  %p67_p8 = scmp.lt.s32.totalorder %s334_s9, 3 }
   0xc   : > { %s451_s17 = scalar_select %p390_p6, 1, 0 }
   0xd   : > { %p208_p9 = scmp.eq.s32.totalorder %s369_s10, 0  ;;  %p397_p10 = pnand %p185_p7, %p67_p8 }
   0xe   : > { %s336_s19 = smov [#allocation2]  }
   0xf   : > { %s80_s20 = sshll.u32 %s336_s19, 4  ;;  %p200_p11 = pneg %p397_p10  ;;  %s81_s20 = int_to_ptr.vmem [resolvable:$true] %s80_s20 }
  0x10   : > { %s255_s21 = scalar_lea.vmem %s81_s20, 128  ;;  %p263_p3 = scmp.lt.s32.totalorder %s81_s20, %s81_s20 }
  0x11   : > { %p201_p12 = pnand %p208_p9, %p200_p11  ;;  %p256_p0 = scmp.ne.s32.totalorder %s81_s20, %s255_s21 }
  0x12   : > { %p264_p4 = scmp.lt.s32.totalorder %s255_s21, %s255_s21 }
  0x13   : > { %p246_p13 = pneg %p201_p12 }
  0x14   : > { %p265_p6 = por %p264_p4, %p263_p3 }
  0x15   : > { %p258_p1 = pnand %p256_p0, %p246_p13 }
  0x17   : > { %p259_p2 = pneg %p258_p1 }
  0x19   : > { %p266_p7 = pnand %p265_p6, %p259_p2 }
  0x1b   : > { %269 = shalt.err (!%p266_p7)
}
  0x1c   : > { %203 = dma.hbm_to_vmem [thread:$0]  (!%p201_p12), %s448_s0, 128, %s81_s20, [#allocation3]  }
  0x1d   : > { %93 = sbr.rel (%p397_p10) target bundleno = 60 (0x3c), region = 24 }
  0x22   : > { %313 = dma.done.wait (%p208_p9), [#allocation3], 128  }
  0x23   : > { %315 = vsyncadd (%p208_p9), [#allocation3], 4294967168  ;;  %s105_s24 = sand.u32 1, %s326_s7   ;;  %s191_s28 = sshll.u32 %s369_s10, 7  ;;  %v108_v0 = vld [vmem:[#allocation2] sm:$0xff] }
  0x24   : > { %s189_s25 = sshll.u32 %s105_s24, 3  ;;  %v109_v1 = vmul.f32 2.0, %v108_v0  ;;  %s123_s2 = scalar_lea.hbm %s449_s1, %s191_s28 }
  0x25   : > { %s107_s26 = scalar_lea.vmem [#allocation5], %s189_s25  ;;  %s112_s3 = scalar_lea.sflag [#allocation4], %s105_s24 }
  0x26   : > { %s125_s27 = sshll.u32 %s107_s26, 4  ;;  %110 = vst [vmem:[%s107_s26] sm:$0xff] %v109_v1  ;;  %s337_s5 = smov [#allocation5]   ;;  %s126_s27 = int_to_ptr.vmem [resolvable:$true] %s125_s27 }
  0x27   : > { %s270_s4 = scalar_lea.vmem %s126_s27, 128  ;;  %s274_s11 = sshll.u32 %s337_s5, 4  ;;  %s275_s11 = int_to_ptr.vmem [resolvable:$false] %s274_s11 }
  0x28   : > { %p271_p6 = scmp.ne.s32.totalorder %s126_s27, %s270_s4  ;;  %s276_s13 = scalar_lea.vmem %s275_s11, 256 }
  0x29   : > { %p277_p10 = scmp.lt.s32.totalorder %s126_s27, %s275_s11  ;;  %p278_p11 = scmp.lt.s32.totalorder %s276_s13, %s270_s4 }
  0x2a   : > { %p272_p8 = pnand %p271_p6, %p386_p5 }
  0x2b   : > { %p279_p12 = por %p278_p11, %p277_p10 }
  0x2c   : > { %p273_p9 = pneg %p272_p8 }
  0x2e   : > { %p280_p13 = pnand %p279_p12, %p273_p9 }
  0x30   : > { %283 = shalt.err (!%p280_p13)
}
  0x31   : > { %s284_s10 = scalar_lea.hbm %s123_s2, 128  ;;  %s288_s19 = scalar_lea.hbm %s449_s1, 256 }
  0x32   : > { %p285_p0 = scmp.ne.s32.totalorder %s123_s2, %s284_s10  ;;  %p289_p3 = scmp.lt.s32.totalorder %s123_s2, %s449_s1 }
  0x33   : > { %p290_p4 = scmp.lt.s32.totalorder %s288_s19, %s284_s10 }
  0x34   : > { %p286_p1 = pnand %p285_p0, %p386_p5 }
  0x35   : > { %p291_p7 = por %p290_p4, %p289_p3 }
  0x36   : > { %p287_p2 = pneg %p286_p1 }
  0x38   : > { %p292_p6 = pnand %p291_p7, %p287_p2 }
  0x3a   : > { %295 = shalt.err (!%p292_p6)
}
  0x3b   : > { %198 = dma.vmem_to_hbm [thread:$0]  (%p386_p5), %s126_s27, 128, %s123_s2, %s112_s3  }
  0x3c PF: > { %p210_p8 = scmp.ge.s32.totalorder %s334_s9, 2  ;;  %s137_s22 = sand.u32 1, %s322_s6  }
  0x3d   : > { %p453_p9 = scmp.ne.s32.totalorder %s451_s17, 0  ;;  %s138_s23 = scalar_lea.sflag [#allocation4], %s137_s22 }
  0x3f   : > { %p205_p10 = pnand %p210_p8, %p453_p9 }
  0x41   : > { %p206_p11 = pneg %p205_p10 }
  0x43   : > { %317 = dma.done.wait (%p206_p11), %s138_s23, 128  }
  0x44   : > { %319 = vsyncadd (%p206_p11), %s138_s23, 4294967168  ;;  %p12_p12 = scmp.ge.s32.totalorder %s373_s12, 4   ;;  %s454_s6 = smov %s326_s7 }
  0x45   : > { %s455_s7 = smov %s330_s8  ;;  %s456_s8 = smov %s384_s15 }
  0x46   : > { %s457_s9 = smov %s373_s12  ;;  %14 = sbr.rel (!%p12_p12) target bundleno = 4 (0x4), region = 61 }
  0x4b   :  { %143 = vsyncpa [#allocation3], 1 }
  0x4c   :  { %145 = vsyncpa [#allocation3 + $0x1], 1 }
  0x4d   :  { %146 = vsyncpa [#allocation4], 1 }
  0x4e   :  { %148 = vsyncpa [#allocation4 + $0x1], 1 }

// kernel: forward.1
= control target key start
LH: loop header
LB: loop body
LE: loop exit
PB: predicated region body
PF: predicated region fallthrough
CT: control target
= control target key end

     0   :  { %s559_s0 = inlined_call_operand.hbm [shape: f32[8,768], index: 0, kind: input, shape index: {}]   ;;  %s560_s1 = inlined_call_operand.hbm [shape: f32[768,1], index: 1, kind: input, shape index: {}]   ;;  %s561_s2 = inlined_call_operand.<no memory space> [shape: f32[1,1], index: 2, kind: input, shape index: {}]   ;;  %s562_s3 = inlined_call_operand.vmem [shape: f32[8,1], index: 3, kind: output, shape index: {}]  }
   0x1   :  { %v8_v0 = vstv %s561_s2 }
   0x2   :  { %9 = vst [vmem:[#allocation2] sm:$0x1] %v8_v0 }
   0x3   :  { %10 = vsyncpa [#allocation4], 0 }
   0x4   :  { %11 = vsyncpa [#allocation6], 0  ;;  %s523_s14 = smov [#allocation3]   ;;  %s524_s16 = smov [#allocation5]  }
   0x5   :  { %s18_s15 = sshll.u32 %s523_s14, 4  ;;  %s27_s17 = sshll.u32 %s524_s16, 4  ;;  %s19_s15 = int_to_ptr.vmem [resolvable:$true] %s18_s15  ;;  %s28_s17 = int_to_ptr.vmem [resolvable:$true] %s27_s17 }
   0x6   :  { %s487_s18 = scalar_lea.vmem %s19_s15, 768  ;;  %p492_p1 = scmp.lt.s32.totalorder %s19_s15, %s19_s15 }
   0x7   :  { %p488_p0 = scmp.ne.s32.totalorder %s19_s15, %s487_s18  ;;  %p493_p2 = scmp.lt.s32.totalorder %s487_s18, %s487_s18 }
   0x9   :  { %p494_p3 = por %p493_p2, %p492_p1 }
   0xb   :  { %p495_p4 = pnand %p494_p3, %p488_p0 }
   0xd   :  { %498 = shalt.err (!%p495_p4)
}
   0xe   :  { %21 = dma.hbm_to_vmem [thread:$0]  %s559_s0, 768, %s19_s15, [#allocation4]  }
   0xf   :  { %s507_s2 = scalar_lea.vmem %s28_s17, 12288  ;;  %p512_p6 = scmp.lt.s32.totalorder %s28_s17, %s28_s17 }
  0x10   :  { %p508_p5 = scmp.ne.s32.totalorder %s28_s17, %s507_s2  ;;  %p513_p7 = scmp.lt.s32.totalorder %s507_s2, %s507_s2 }
  0x12   :  { %p514_p8 = por %p513_p7, %p512_p6 }
  0x14   :  { %p515_p9 = pnand %p514_p8, %p508_p5 }
  0x16   :  { %518 = shalt.err (!%p515_p9)
}
  0x17   :  { %s525_s21 = smov 128   ;;  %s526_s22 = smov 8  }
  0x18   :  { %33 = dma.hbm_to_vmem [thread:$0]  %s560_s1, 12288, %s28_s17, [#allocation6], %s525_s21, %s525_s21, %s526_s22  }
  0x19   :  { %519 = dma.done.wait [#allocation4], 768  }
  0x1a   :  { %520 = vsyncadd [#allocation4], 4294966528 }
  0x1b   :  { %521 = dma.done.wait [#allocation6], 12288  }
  0x1c   :  { %522 = vsyncadd [#allocation6], 4294955008  ;;  %v79_v1 = vld [vmem:[#allocation5 + $0xf8] sm:$0xff]  ;;  %v78_v3 = vld [vmem:[#allocation5 + $0xf0] sm:$0xff]  ;;  %vm361_vm0 = vcmask 7168  }
  0x1d   :  { %v63_v2 = vld [vmem:[#allocation5 + $0x78] sm:$0xff]  ;;  %370 = vmatprep.subr.mxu0 %v79_v1  ;;  %v62_v5 = vld [vmem:[#allocation5 + $0x70] sm:$0xff]  ;;  %v77_v7 = vld [vmem:[#allocation5 + $0xe8] sm:$0xff] }
  0x1e   :  { %v111_v4 = vld [vmem:[#allocation5 + $0x1f8] sm:$0xff]  ;;  %371 = vmatpush3.msra.mxu0 %v63_v2  ;;  %v110_v8 = vld [vmem:[#allocation5 + $0x1f0] sm:$0xff]  ;;  %v61_v9 = vld [vmem:[#allocation5 + $0x68] sm:$0xff] }
  0x1f   :  { %v95_v6 = vld [vmem:[#allocation5 + $0x178] sm:$0xff]  ;;  %405 = vmatprep.subr.mxu1 %v111_v4  ;;  %372 = vmatprep.subr.mxu0 %v78_v3  ;;  %v94_v10 = vld [vmem:[#allocation5 + $0x170] sm:$0xff]  ;;  %v109_v11 = vld [vmem:[#allocation5 + $0x1e8] sm:$0xff] }
  0x20   :  { %406 = vmatpush3.msra.mxu1 %v95_v6  ;;  %373 = vmatpush3.msra.mxu0 %v62_v5  ;;  %v76_v12 = vld [vmem:[#allocation5 + $0xe0] sm:$0xff]  ;;  %v93_v13 = vld [vmem:[#allocation5 + $0x168] sm:$0xff]  ;;  %v75_v16 = vld [vmem:[#allocation5 + $0xd8] sm:$0xff] }
  0x21   :  { %407 = vmatprep.subr.mxu1 %v110_v8  ;;  %374 = vmatprep.subr.mxu0 %v77_v7  ;;  %v60_v14 = vld [vmem:[#allocation5 + $0x60] sm:$0xff]  ;;  %v59_v18 = vld [vmem:[#allocation5 + $0x58] sm:$0xff]  ;;  %v74_v20 = vld [vmem:[#allocation5 + $0xd0] sm:$0xff] }
  0x22   :  { %408 = vmatpush3.msra.mxu1 %v94_v10  ;;  %v108_v15 = vld [vmem:[#allocation5 + $0x1e0] sm:$0xff]  ;;  %375 = vmatpush3.msra.mxu0 %v61_v9  ;;  %v107_v19 = vld [vmem:[#allocation5 + $0x1d8] sm:$0xff]  ;;  %v58_v22 = vld [vmem:[#allocation5 + $0x50] sm:$0xff] }
  0x23   :  { %409 = vmatprep.subr.mxu1 %v109_v11  ;;  %v92_v17 = vld [vmem:[#allocation5 + $0x160] sm:$0xff]  ;;  %376 = vmatprep.subr.mxu0 %v76_v12  ;;  %v91_v21 = vld [vmem:[#allocation5 + $0x158] sm:$0xff]  ;;  %v106_v23 = vld [vmem:[#allocation5 + $0x1d0] sm:$0xff] }
  0x24   :  { %410 = vmatpush3.msra.mxu1 %v93_v13  ;;  %377 = vmatpush3.msra.mxu0 %v60_v14  ;;  %v73_v24 = vld [vmem:[#allocation5 + $0xc8] sm:$0xff]  ;;  %v90_v25 = vld [vmem:[#allocation5 + $0x150] sm:$0xff]  ;;  %v72_v28 = vld [vmem:[#allocation5 + $0xc0] sm:$0xff] }
  0x25   :  { %411 = vmatprep.subr.mxu1 %v108_v15  ;;  %378 = vmatprep.subr.mxu0 %v75_v16  ;;  %v57_v26 = vld [vmem:[#allocation5 + $0x48] sm:$0xff]  ;;  %v56_v30 = vld [vmem:[#allocation5 + $0x40] sm:$0xff]  ;;  %v71_v32 = vld [vmem:[#allocation5 + $0xb8] sm:$0xff] }
  0x26   :  { %412 = vmatpush3.msra.mxu1 %v92_v17  ;;  %379 = vmatpush3.msra.mxu0 %v59_v18  ;;  %v105_v27 = vld [vmem:[#allocation5 + $0x1c8] sm:$0xff]  ;;  %v104_v31 = vld [vmem:[#allocation5 + $0x1c0] sm:$0xff]  ;;  %v55_v34 = vld [vmem:[#allocation5 + $0x38] sm:$0xff] }
  0x27   :  { %413 = vmatprep.subr.mxu1 %v107_v19  ;;  %380 = vmatprep.subr.mxu0 %v74_v20  ;;  %v89_v29 = vld [vmem:[#allocation5 + $0x148] sm:$0xff]  ;;  %v88_v33 = vld [vmem:[#allocation5 + $0x140] sm:$0xff]  ;;  %v103_v35 = vld [vmem:[#allocation5 + $0x1b8] sm:$0xff] }
  0x28   :  { %414 = vmatpush3.msra.mxu1 %v91_v21  ;;  %381 = vmatpush3.msra.mxu0 %v58_v22  ;;  %v70_v36 = vld [vmem:[#allocation5 + $0xb0] sm:$0xff]  ;;  %v87_v37 = vld [vmem:[#allocation5 + $0x138] sm:$0xff]  ;;  %v69_v40 = vld [vmem:[#allocation5 + $0xa8] sm:$0xff] }
  0x29   :  { %415 = vmatprep.subr.mxu1 %v106_v23  ;;  %382 = vmatprep.subr.mxu0 %v73_v24  ;;  %v54_v38 = vld [vmem:[#allocation5 + $0x30] sm:$0xff]  ;;  %v53_v42 = vld [vmem:[#allocation5 + $0x28] sm:$0xff]  ;;  %v68_v44 = vld [vmem:[#allocation5 + $0xa0] sm:$0xff] }
  0x2a   :  { %416 = vmatpush3.msra.mxu1 %v90_v25  ;;  %383 = vmatpush3.msra.mxu0 %v57_v26  ;;  %v102_v39 = vld [vmem:[#allocation5 + $0x1b0] sm:$0xff]  ;;  %v101_v43 = vld [vmem:[#allocation5 + $0x1a8] sm:$0xff]  ;;  %v52_v46 = vld [vmem:[#allocation5 + $0x20] sm:$0xff] }
  0x2b   :  { %417 = vmatprep.subr.mxu1 %v105_v27  ;;  %384 = vmatprep.subr.mxu0 %v72_v28  ;;  %v86_v41 = vld [vmem:[#allocation5 + $0x130] sm:$0xff]  ;;  %v85_v45 = vld [vmem:[#allocation5 + $0x128] sm:$0xff]  ;;  %v100_v47 = vld [vmem:[#allocation5 + $0x1a0] sm:$0xff] }
  0x2c   :  { %418 = vmatpush3.msra.mxu1 %v89_v29  ;;  %385 = vmatpush3.msra.mxu0 %v56_v30  ;;  %v67_v48 = vld [vmem:[#allocation5 + $0x98] sm:$0xff]  ;;  %v84_v49 = vld [vmem:[#allocation5 + $0x120] sm:$0xff]  ;;  %v66_v52 = vld [vmem:[#allocation5 + $0x90] sm:$0xff] }
  0x2d   :  { %419 = vmatprep.subr.mxu1 %v104_v31  ;;  %386 = vmatprep.subr.mxu0 %v71_v32  ;;  %v51_v50 = vld [vmem:[#allocation5 + $0x18] sm:$0xff]  ;;  %v50_v54 = vld [vmem:[#allocation5 + $0x10] sm:$0xff]  ;;  %v65_v56 = vld [vmem:[#allocation5 + $0x88] sm:$0xff] }
  0x2e   :  { %420 = vmatpush3.msra.mxu1 %v88_v33  ;;  %387 = vmatpush3.msra.mxu0 %v55_v34  ;;  %v99_v51 = vld [vmem:[#allocation5 + $0x198] sm:$0xff]  ;;  %v98_v55 = vld [vmem:[#allocation5 + $0x190] sm:$0xff]  ;;  %v49_v58 = vld [vmem:[#allocation5 + $0x8] sm:$0xff] }
  0x2f   :  { %421 = vmatprep.subr.mxu1 %v103_v35  ;;  %388 = vmatprep.subr.mxu0 %v70_v36  ;;  %v83_v53 = vld [vmem:[#allocation5 + $0x118] sm:$0xff]  ;;  %v82_v57 = vld [vmem:[#allocation5 + $0x110] sm:$0xff]  ;;  %v97_v59 = vld [vmem:[#allocation5 + $0x188] sm:$0xff] }
  0x30   :  { %422 = vmatpush3.msra.mxu1 %v87_v37  ;;  %389 = vmatpush3.msra.mxu0 %v54_v38  ;;  %v64_v60 = vld [vmem:[#allocation5 + $0x80] sm:$0xff]  ;;  %v43_v61 = vld [vmem:[#allocation3 + $0x8] sm:$0xff]  ;;  %v81_v63 = vld [vmem:[#allocation5 + $0x108] sm:$0xff] }
  0x31   :  { %423 = vmatprep.subr.mxu1 %v102_v39  ;;  %390 = vmatprep.subr.mxu0 %v69_v40  ;;  %v48_v62 = vld [vmem:[#allocation5] sm:$0xff]  ;;  %v42_v0 = vld [vmem:[#allocation3] sm:$0xff]  ;;  %v143_v2 = vld [vmem:[#allocation5 + $0x2f8] sm:$0xff] }
  0x32   :  { %424 = vmatpush3.msra.mxu1 %v86_v41  ;;  %391 = vmatpush3.msra.mxu0 %v53_v42  ;;  %v96_v1 = vld [vmem:[#allocation5 + $0x180] sm:$0xff]  ;;  %v45_v4 = vld [vmem:[#allocation3 + $0x18] sm:$0xff]  ;;  %v127_v5 = vld [vmem:[#allocation5 + $0x278] sm:$0xff] }
  0x33   :  { %425 = vmatprep.subr.mxu1 %v101_v43  ;;  %392 = vmatprep.subr.mxu0 %v68_v44  ;;  %v80_v3 = vld [vmem:[#allocation5 + $0x100] sm:$0xff]  ;;  %v142_v7 = vld [vmem:[#allocation5 + $0x2f0] sm:$0xff]  ;;  %v47_v9 = vld [vmem:[#allocation3 + $0x28] sm:$0xff] }
  0x34   :  { %426 = vmatpush3.msra.mxu1 %v85_v45  ;;  %393 = vmatpush3.msra.mxu0 %v52_v46  ;;  %v44_v6 = vld [vmem:[#allocation3 + $0x10] sm:$0xff]  ;;  %v126_v8 = vld [vmem:[#allocation5 + $0x270] sm:$0xff]  ;;  %v141_v10 = vld [vmem:[#allocation5 + $0x2e8] sm:$0xff] }
  0x35   :  { %427 = vmatprep.subr.mxu1 %v100_v47  ;;  %394 = vmatprep.subr.mxu0 %v67_v48  ;;  %v125_v11 = vld [vmem:[#allocation5 + $0x268] sm:$0xff]  ;;  %v140_v12 = vld [vmem:[#allocation5 + $0x2e0] sm:$0xff]  ;;  %v139_v14 = vld [vmem:[#allocation5 + $0x2d8] sm:$0xff] }
  0x36   :  { %428 = vmatpush3.msra.mxu1 %v84_v49  ;;  %395 = vmatpush3.msra.mxu0 %v51_v50  ;;  %v124_v13 = vld [vmem:[#allocation5 + $0x260] sm:$0xff]  ;;  %v123_v15 = vld [vmem:[#allocation5 + $0x258] sm:$0xff]  ;;  %v138_v16 = vld [vmem:[#allocation5 + $0x2d0] sm:$0xff] }
  0x37   :  { %429 = vmatprep.subr.mxu1 %v99_v51  ;;  %396 = vmatprep.subr.mxu0 %v66_v52  ;;  %v122_v17 = vld [vmem:[#allocation5 + $0x250] sm:$0xff]  ;;  %v137_v18 = vld [vmem:[#allocation5 + $0x2c8] sm:$0xff]  ;;  %v136_v20 = vld [vmem:[#allocation5 + $0x2c0] sm:$0xff] }
  0x38   :  { %430 = vmatpush3.msra.mxu1 %v83_v53  ;;  %397 = vmatpush3.msra.mxu0 %v50_v54  ;;  %v121_v19 = vld [vmem:[#allocation5 + $0x248] sm:$0xff]  ;;  %v120_v21 = vld [vmem:[#allocation5 + $0x240] sm:$0xff]  ;;  %v135_v22 = vld [vmem:[#allocation5 + $0x2b8] sm:$0xff] }
  0x39   :  { %431 = vmatprep.subr.mxu1 %v98_v55  ;;  %398 = vmatprep.subr.mxu0 %v65_v56  ;;  %v119_v23 = vld [vmem:[#allocation5 + $0x238] sm:$0xff]  ;;  %v134_v24 = vld [vmem:[#allocation5 + $0x2b0] sm:$0xff]  ;;  %v133_v26 = vld [vmem:[#allocation5 + $0x2a8] sm:$0xff] }
  0x3a   :  { %432 = vmatpush3.msra.mxu1 %v82_v57  ;;  %399 = vmatpush3.msra.mxu0 %v49_v58  ;;  %v118_v25 = vld [vmem:[#allocation5 + $0x230] sm:$0xff]  ;;  %v117_v27 = vld [vmem:[#allocation5 + $0x228] sm:$0xff]  ;;  %v132_v28 = vld [vmem:[#allocation5 + $0x2a0] sm:$0xff] }
  0x3b   :  { %433 = vmatprep.subr.mxu1 %v97_v59  ;;  %400 = vmatprep.subr.mxu0 %v64_v60  ;;  %v116_v29 = vld [vmem:[#allocation5 + $0x220] sm:$0xff]  ;;  %v131_v30 = vld [vmem:[#allocation5 + $0x298] sm:$0xff]  ;;  %v130_v32 = vld [vmem:[#allocation5 + $0x290] sm:$0xff] }
  0x3c   :  { %215 = vmatprep.mubr.f32.mxu0 %v43_v61  ;;  %401 = vmatpush3.msra.mxu0 %v48_v62  ;;  %v115_v31 = vld [vmem:[#allocation5 + $0x218] sm:$0xff]  ;;  %v114_v33 = vld [vmem:[#allocation5 + $0x210] sm:$0xff]  ;;  %v129_v34 = vld [vmem:[#allocation5 + $0x288] sm:$0xff] }
  0x3d   :  { %434 = vmatpush3.msra.mxu1 %v81_v63  ;;  %216 = vmatmul.mubr.f32.vlgmr.msra.gmra.mxu0 %v42_v0  ;;  %v113_v35 = vld [vmem:[#allocation5 + $0x208] sm:$0xff]  ;;  %v128_v36 = vld [vmem:[#allocation5 + $0x280] sm:$0xff]  ;;  %v46_v38 = vld [vmem:[#allocation3 + $0x20] sm:$0xff] }
  0x3e   :  { %435 = vmatprep.subr.mxu1 %v96_v1  ;;  %440 = vmatprep.subr.mxu0 %v143_v2  ;;  %v112_v37 = vld [vmem:[#allocation5 + $0x200] sm:$0xff]  ;;  %v369_v43 = vld [vmem:[#allocation2] ss:$0 sm:$0xff] }
  0x3f   :  { %436 = vmatpush3.msra.mxu1 %v80_v3  ;;  %285 = vmatprep.mubr.f32.mxu1 %v45_v4 }
  0x40   :  { %441 = vmatpush3.msra.mxu0 %v127_v5  ;;  %286 = vmatmul.mubr.f32.vlgmr.msra.gmra.mxu1 %v44_v6 }
  0x41   :  { %442 = vmatprep.subr.mxu0 %v142_v7  ;;  %355 = vmatprep.mubr.f32.mxu0 %v47_v9 }
  0x42   :  { %443 = vmatpush3.msra.mxu0 %v126_v8 }
  0x43   :  { %444 = vmatprep.subr.mxu0 %v141_v10 }
  0x44   :  { %445 = vmatpush3.msra.mxu0 %v125_v11 }
  0x45   :  { %446 = vmatprep.subr.mxu0 %v140_v12 }
  0x46   :  { %447 = vmatpush3.msra.mxu0 %v124_v13 }
  0x47   :  { %448 = vmatprep.subr.mxu0 %v139_v14 }
  0x48   :  { %449 = vmatpush3.msra.mxu0 %v123_v15 }
  0x49   :  { %450 = vmatprep.subr.mxu0 %v138_v16 }
  0x4a   :  { %451 = vmatpush3.msra.mxu0 %v122_v17 }
  0x4b   :  { %452 = vmatprep.subr.mxu0 %v137_v18 }
  0x4c   :  { %453 = vmatpush3.msra.mxu0 %v121_v19 }
  0x4d   :  { %454 = vmatprep.subr.mxu0 %v136_v20 }
  0x4e   :  { %455 = vmatpush3.msra.mxu0 %v120_v21 }
  0x4f   :  { %456 = vmatprep.subr.mxu0 %v135_v22 }
  0x50   :  { %457 = vmatpush3.msra.mxu0 %v119_v23 }
  0x51   :  { %458 = vmatprep.subr.mxu0 %v134_v24 }
  0x52   :  { %459 = vmatpush3.msra.mxu0 %v118_v25 }
  0x53   :  { %460 = vmatprep.subr.mxu0 %v133_v26 }
  0x54   :  { %461 = vmatpush3.msra.mxu0 %v117_v27 }
  0x55   :  { %462 = vmatprep.subr.mxu0 %v132_v28 }
  0x56   :  { %463 = vmatpush3.msra.mxu0 %v116_v29 }
  0x57   :  { %464 = vmatprep.subr.mxu0 %v131_v30 }
  0x58   :  { %465 = vmatpush3.msra.mxu0 %v115_v31 }
  0x59   :  { %466 = vmatprep.subr.mxu0 %v130_v32 }
  0x5a   :  { %467 = vmatpush3.msra.mxu0 %v114_v33 }
  0x5b   :  { %468 = vmatprep.subr.mxu0 %v129_v34 }
  0x5c   :  { %469 = vmatpush3.msra.mxu0 %v113_v35 }
  0x5d   :  { %470 = vmatprep.subr.mxu0 %v128_v36 }
  0x5e   :  { %471 = vmatpush3.msra.mxu0 %v112_v37 }
  0x5f   :  { %356 = vmatmul.mubr.f32.vlgmr.msra.gmra.mxu0 %v46_v38 }
  0xfd   :  { %v402_v39 = vpop.f32.mrf.mxu0 }
  0xff   :  { %v403_v40 = vpop.f32.mrf.mxu0 }
 0x100   :  { %v437_v41 = vpop.f32.mrf.mxu1  ;;  %v404_v42 = vadd.f32 %v403_v40, %v402_v39 }
 0x102   :  { %v438_v44 = vpop.f32.mrf.mxu1  ;;  %v218_v45 = vadd.f32 %v404_v42, %v369_v43 }
 0x103   :  { %v439_v46 = vadd.f32 %v438_v44, %v437_v41 }
 0x105   :  { %v288_v49 = vadd.f32 %v439_v46, %v218_v45 }
 0x11f   :  { %v472_v47 = vpop.f32.mrf.mxu0 }
 0x121   :  { %v473_v48 = vpop.f32.mrf.mxu0 }
 0x122   :  { %v474_v50 = vadd.f32 %v473_v48, %v472_v47 }
 0x124   :  { %v358_v51 = vadd.f32 %v474_v50, %v288_v49 }
 0x126   :  { %362 = vst.msk [vmem:[%s562_s3] sm:$0xff] %vm361_vm0, %v358_v51 }
 0x127   :  { %367 = vsyncpa [#allocation4], 1 }
 0x128   :  { %368 = vsyncpa [#allocation6], 1 }

</bundles_post_ra>
